<compile_context>
chip_gen: v5e
topology: v5e:2x2
jax: 0.10.0
libtpu: 0.0.40
codegen_flags: <defaults>
</compile_context>

<pallas_src>
import functools

import jax
import jax.numpy as jnp
from jax.experimental import pallas as pl
from jax.experimental.pallas import tpu as pltpu

LN_EPS = 1e-5


def _patch_merging_kernel(x_ref, w_ref, b_ref, o_ref, *, wp, c):
    # x_ref: (tr, 2*W*C)   rows = [even H-row (W*C) | odd H-row (W*C)]
    # w_ref: (4C, 2C)      gamma-folded, channel-permuted reduction weight
    # b_ref: (1, 2C)       beta @ W^T (f32)
    # o_ref: (tr*Wp, 2C)   one output row per merged 2x2 patch
    tr = x_ref.shape[0]
    half = wp * 2 * c                                   # = W*C

    # Assemble the merged operand ONCE per block.  Natural channel order is
    # [x0 | x2 | x1 | x3]; the parameters were permuted to match outside.
    even = x_ref[:, :half].reshape(tr, wp, 2 * c)       # [x0 | x2]
    odd = x_ref[:, half:].reshape(tr, wp, 2 * c)        # [x1 | x3]
    xm = jnp.concatenate([even, odd], axis=-1)          # (tr, Wp, 4C)
    xm = xm.reshape(tr * wp, 4 * c).astype(jnp.float32)

    # LayerNorm over 4C (statistics are permutation-invariant), f32 math.
    mean = jnp.mean(xm, axis=-1, keepdims=True)
    cen = xm - mean
    var = jnp.mean(cen * cen, axis=-1, keepdims=True)
    yn = cen * jax.lax.rsqrt(var + LN_EPS)

    # Single big matmul (M = tr*Wp, K = 4C, N = 2C); bias added once per
    # block; single lane-dense store of the whole block.
    w = w_ref[...]
    y = yn.astype(w.dtype)
    r = jnp.dot(y, w, preferred_element_type=jnp.float32)
    r = r + b_ref[...].astype(jnp.float32)
    o_ref[...] = r.astype(o_ref.dtype)


def _vmem_capacity_bytes():
    try:
        info = pltpu.get_tpu_info()
        cap = getattr(info, "vmem_capacity_bytes", None)
        if cap:
            return int(cap)
    except Exception:
        pass
    return 64 * 2**20        # conservative fallback (v7x per-TensorCore size)


def _round_up(v, m):
    return ((v + m - 1) // m) * m


def _choose_block_rows(n_rows, W, C, x_itemsize, o_itemsize, mm_itemsize,
                       budget_bytes, min_steps=4):
    """Pick tr (merged-row-strips per block).

    Budget covers: double-buffered input + output blocks, resident weight and
    bias, plus the in-kernel f32 temporaries (merged / centered / normalized
    operand).  tr is rounded to a multiple of 8 (sublane) — not 128 — and the
    grid is rebalanced to near-equal blocks with at least `min_steps` steps
    (so megacore / v7x 2-TensorCore sharding has work on every core).
    """
    fixed = (4 * C) * (2 * C) * mm_itemsize + (2 * C) * 4
    per_row = (2 * (2 * W * C) * x_itemsize       # input block, double-buffered
               + 2 * (W * C) * o_itemsize         # output block, double-buffered
               + 3 * (2 * W * C) * 4)             # f32 temporaries in the kernel
    avail = max(budget_bytes - fixed, per_row)
    tr_max = max(int(avail // per_row), 1)

    want_steps = min(min_steps, max(n_rows // 8, 1))
    n_steps = max(pl.cdiv(n_rows, tr_max), want_steps)
    if n_steps > 1 and n_steps % 2 == 1:
        n_steps += 1                               # balanced 2-core sharding
    tr = pl.cdiv(n_rows, n_steps)
    if tr >= 8:
        tr = _round_up(tr, 8)
    return max(min(tr, n_rows), 1)


def patch_merging(x, H, W, gamma, beta, weight, *, compute_dtype=None,
                  vmem_budget_bytes=None):
    """Swin PatchMerging forward.

    x: (B, H*W, C); gamma/beta: (4C,) LayerNorm affine params;
    weight: (2C, 4C), torch nn.Linear(bias=False) layout.
    compute_dtype: MXU operand dtype; default bf16 when the weight is f32.
    """
    B, L, C = x.shape
    assert L == H * W, "input feature has wrong size"

    # odd H/W: zero-pad exactly like the PyTorch module (rare edge case).
    if (H % 2 == 1) or (W % 2 == 1):
        ph, pw = H % 2, W % 2
        xg = x.reshape(B, H, W, C)
        xg = jnp.pad(xg, ((0, 0), (0, ph), (0, pw), (0, 0)))
        H, W = H + ph, W + pw
        x = xg.reshape(B, H * W, C)

    Hp, Wp = H // 2, W // 2
    n_rows = B * Hp
    row_w = 2 * W * C                        # even row (W*C) + odd row (W*C)
    x3 = x.reshape(n_rows, row_w)            # free, row-major compatible

    if compute_dtype is None:
        compute_dtype = (jnp.bfloat16 if weight.dtype == jnp.float32
                         else weight.dtype)

    # Natural (memory) channel order is [x0 | x2 | x1 | x3]; permute the tiny
    # parameters (torch order [x0|x1|x2|x3]) instead of the activations, then
    # fold gamma into the weight and beta into a precomputed bias.
    idx = jnp.concatenate([jnp.arange(0, C), jnp.arange(2 * C, 3 * C),
                           jnp.arange(C, 2 * C), jnp.arange(3 * C, 4 * C)])
    g_n = gamma[idx].astype(jnp.float32)
    b_n = beta[idx].astype(jnp.float32)
    wt_f32 = weight[:, idx].T.astype(jnp.float32)            # (4C, 2C)
    w_fold = (g_n[:, None] * wt_f32).astype(compute_dtype)   # gamma folded in
    bias_fold = b_n[None, :] @ wt_f32                        # (1, 2C), f32

    # Generation-aware VMEM sizing (v5e/v6e: 128 MiB, v7x: 64 MiB per core).
    cap = _vmem_capacity_bytes()
    if vmem_budget_bytes is None:
        vmem_budget_bytes = int(min(cap * 3 // 8, 48 * 2**20))
    vmem_limit = int(min(cap * 3 // 4, 96 * 2**20))

    tr = _choose_block_rows(n_rows, W, C,
                            jnp.dtype(x.dtype).itemsize,
                            jnp.dtype(x.dtype).itemsize,
                            jnp.dtype(compute_dtype).itemsize,
                            vmem_budget_bytes)
    grid = (pl.cdiv(n_rows, tr),)

    out2 = pl.pallas_call(
        functools.partial(_patch_merging_kernel, wp=Wp, c=C),
        out_shape=jax.ShapeDtypeStruct((n_rows * Wp, 2 * C), x.dtype),
        grid_spec=pltpu.PrefetchScalarGridSpec(
            num_scalar_prefetch=0,
            grid=grid,
            in_specs=[
                pl.BlockSpec((tr, row_w), lambda i: (i, 0)),
                # grid-invariant params: single-buffered to save VMEM
                pl.BlockSpec((4 * C, 2 * C), lambda i: (0, 0),
                             pipeline_mode=pl.Buffered(1)),
                pl.BlockSpec((1, 2 * C), lambda i: (0, 0),
                             pipeline_mode=pl.Buffered(1)),
            ],
            out_specs=pl.BlockSpec((tr * Wp, 2 * C), lambda i: (i, 0)),
        ),
        compiler_params=pltpu.CompilerParams(
            dimension_semantics=("parallel",),
            vmem_limit_bytes=vmem_limit,
        ),
    )(x3, w_fold, bias_fold)

    # (B*Hp*Wp, 2C) -> (B, Hp*Wp, 2C) is a free reshape (row-major compatible).
    return out2.reshape(B, Hp * Wp, 2 * C)


def _reference(x, H, W, gamma, beta, weight):
    B, L, C = x.shape
    xg = x.reshape(B, H, W, C)
    if (H % 2 == 1) or (W % 2 == 1):
        xg = jnp.pad(xg, ((0, 0), (0, H % 2), (0, W % 2), (0, 0)))
    x0 = xg[:, 0::2, 0::2, :]
    x1 = xg[:, 1::2, 0::2, :]
    x2 = xg[:, 0::2, 1::2, :]
    x3 = xg[:, 1::2, 1::2, :]
    xm = jnp.concatenate([x0, x1, x2, x3], axis=-1)
    xm = xm.reshape(B, -1, 4 * C).astype(jnp.float32)
    mean = jnp.mean(xm, axis=-1, keepdims=True)
    var = jnp.mean((xm - mean) ** 2, axis=-1, keepdims=True)
    xn = (xm - mean) / jnp.sqrt(var + LN_EPS)
    y = xn * gamma + beta
    return jnp.einsum("blk,ok->blo", y, weight.astype(jnp.float32))


if __name__ == "__main__":
    key = jax.random.PRNGKey(0)

    # even H/W case
    B, H, W, dim = 2, 16, 16, 32
    k1, k2, k3, k4 = jax.random.split(key, 4)
    x = jax.random.normal(k1, (B, H * W, dim), dtype=jnp.float32)
    gamma = 1.0 + 0.05 * jax.random.normal(k2, (4 * dim,), dtype=jnp.float32)
    beta = 0.05 * jax.random.normal(k3, (4 * dim,), dtype=jnp.float32)
    weight = 0.02 * jax.random.normal(k4, (2 * dim, 4 * dim), dtype=jnp.float32)

    ref = _reference(x, H, W, gamma, beta, weight)

    # strict f32-compute check (matches the PyTorch module numerics closely)
    out_f32 = jax.block_until_ready(
        patch_merging(x, H, W, gamma, beta, weight, compute_dtype=jnp.float32))
    assert out_f32.shape == (B, (H // 2) * (W // 2), 2 * dim), out_f32.shape
    assert jnp.allclose(out_f32, ref, atol=5e-4, rtol=5e-4), float(
        jnp.max(jnp.abs(out_f32 - ref)))

    # default fast path: bf16 MXU operands, f32 accumulation (looser tolerance)
    out_bf = jax.block_until_ready(patch_merging(x, H, W, gamma, beta, weight))
    assert out_bf.shape == (B, (H // 2) * (W // 2), 2 * dim), out_bf.shape
    assert jnp.allclose(out_bf, ref, atol=2e-2, rtol=2e-2), float(
        jnp.max(jnp.abs(out_bf - ref)))

    # odd H/W case (exercises the module's zero-padding branch), strict f32
    B2, H2, W2, d2 = 1, 7, 7, 16
    x2 = jax.random.normal(k1, (B2, H2 * W2, d2), dtype=jnp.float32)
    g2 = 1.0 + 0.05 * jax.random.normal(k2, (4 * d2,), dtype=jnp.float32)
    b2 = 0.05 * jax.random.normal(k3, (4 * d2,), dtype=jnp.float32)
    w2 = 0.02 * jax.random.normal(k4, (2 * d2, 4 * d2), dtype=jnp.float32)

    out2 = jax.block_until_ready(
        patch_merging(x2, H2, W2, g2, b2, w2, compute_dtype=jnp.float32))
    ref2 = _reference(x2, H2, W2, g2, b2, w2)
    assert out2.shape == (B2, 4 * 4, 2 * d2), out2.shape
    assert jnp.allclose(out2, ref2, atol=5e-4, rtol=5e-4), float(
        jnp.max(jnp.abs(out2 - ref2)))

    print("KERNEL_OK")
</pallas_src>

<mosaic_0001>
module attributes {stable_mosaic.version = 11 : i64} {
  func.func @_patch_merging_kernel(%arg0: i32, %arg1: memref<8x1024xf32, #tpu.memory_space<vmem>>, %arg2: memref<128x64xf32, #tpu.memory_space<vmem>>, %arg3: memref<1x64xf32, #tpu.memory_space<vmem>>, %arg4: memref<64x64xf32, #tpu.memory_space<vmem>>) attributes {dimension_semantics = [#tpu.dimension_semantics<parallel>], iteration_bounds = array<i64: 2>, scalar_prefetch = 0 : i64, scratch_operands = 0 : i64, tpu.core_type = #tpu.core_type<tc>, window_params = [{transform_indices = @transform_0, window_bounds = array<i64: 8, 1024>}, {pipeline_mode = #tpu.pipeline_mode<synchronous>, transform_indices = @transform_1, window_bounds = array<i64: 128, 64>}, {pipeline_mode = #tpu.pipeline_mode<synchronous>, transform_indices = @transform_2, window_bounds = array<i64: 1, 64>}, {transform_indices = @transform_3, window_bounds = array<i64: 64, 64>}]} {
    %c0 = arith.constant 0 : index
    %c0_0 = arith.constant 0 : index
    %0 = vector.load %arg1[%c0, %c0_0] : memref<8x1024xf32, #tpu.memory_space<vmem>>, vector<8x512xf32>
    %1 = vector.shape_cast %0 : vector<8x512xf32> to vector<8x8x64xf32>
    %c0_1 = arith.constant 0 : index
    %c512 = arith.constant 512 : index
    %2 = vector.load %arg1[%c0_1, %c512] : memref<8x1024xf32, #tpu.memory_space<vmem>>, vector<8x512xf32>
    %3 = vector.shape_cast %2 : vector<8x512xf32> to vector<8x8x64xf32>
    %4 = tpu.concatenate %1, %3 in 2 : vector<8x8x64xf32>, vector<8x8x64xf32> -> vector<8x8x128xf32>
    %5 = vector.shape_cast %4 : vector<8x8x128xf32> to vector<64x128xf32>
    %cst = arith.constant dense<0.000000e+00> : vector<64xf32>
    %6 = vector.multi_reduction <add>, %5, %cst [1] : vector<64x128xf32> to vector<64xf32>
    %7 = vector.shape_cast %6 : vector<64xf32> to vector<64x1xf32>
    %cst_2 = arith.constant 1.280000e+02 : f32
    %8 = vector.broadcast %cst_2 : f32 to vector<64x1xf32>
    %9 = arith.divf %7, %8 : vector<64x1xf32>
    %10 = vector.broadcast %9 : vector<64x1xf32> to vector<64x128xf32>
    %11 = arith.subf %5, %10 : vector<64x128xf32>
    %12 = arith.mulf %11, %11 : vector<64x128xf32>
    %cst_3 = arith.constant dense<0.000000e+00> : vector<64xf32>
    %13 = vector.multi_reduction <add>, %12, %cst_3 [1] : vector<64x128xf32> to vector<64xf32>
    %14 = vector.shape_cast %13 : vector<64xf32> to vector<64x1xf32>
    %cst_4 = arith.constant 1.280000e+02 : f32
    %15 = vector.broadcast %cst_4 : f32 to vector<64x1xf32>
    %16 = arith.divf %14, %15 : vector<64x1xf32>
    %cst_5 = arith.constant 9.99999974E-6 : f32
    %17 = vector.broadcast %cst_5 : f32 to vector<64x1xf32>
    %18 = arith.addf %16, %17 : vector<64x1xf32>
    %19 = math.rsqrt %18 : vector<64x1xf32>
    %20 = vector.broadcast %19 : vector<64x1xf32> to vector<64x128xf32>
    %21 = arith.mulf %11, %20 : vector<64x128xf32>
    %c0_6 = arith.constant 0 : index
    %c0_7 = arith.constant 0 : index
    %22 = vector.load %arg2[%c0_6, %c0_7] : memref<128x64xf32, #tpu.memory_space<vmem>>, vector<128x64xf32>
    %cst_8 = arith.constant dense<0.000000e+00> : vector<64x64xf32>
    %23 = tpu.matmul %21, %22, %cst_8 {dimension_numbers = #tpu.dot_dimension_numbers<[1], [0], [0], [1], [0, 0, 1, 1], [], []>} : vector<64x128xf32>, vector<128x64xf32>, vector<64x64xf32> -> vector<64x64xf32>
    %c0_9 = arith.constant 0 : index
    %c0_10 = arith.constant 0 : index
    %24 = vector.load %arg3[%c0_9, %c0_10] : memref<1x64xf32, #tpu.memory_space<vmem>>, vector<1x64xf32>
    %25 = vector.broadcast %24 : vector<1x64xf32> to vector<64x64xf32>
    %26 = arith.addf %23, %25 : vector<64x64xf32>
    %c0_11 = arith.constant 0 : index
    %c0_12 = arith.constant 0 : index
    %27 = vector.load %arg4[%c0_11, %c0_12] : memref<64x64xf32, #tpu.memory_space<vmem>>, vector<64x64xf32>
    tpu.vector_store %arg4[%c0_11, %c0_12], %26 {strides = array<i32>} : memref<64x64xf32, #tpu.memory_space<vmem>>, vector<64x64xf32>,
    return
  }
  func.func @transform_0(%arg0: i32) -> (i32, i32) {
    %c0_i32 = arith.constant 0 : i32
    %c0_i32_0 = arith.constant 0 : i32
    return %arg0, %c0_i32 : i32, i32
  }
  func.func @transform_1(%arg0: i32) -> (i32, i32) {
    %c0_i32 = arith.constant 0 : i32
    %c0_i32_0 = arith.constant 0 : i32
    %c0_i32_1 = arith.constant 0 : i32
    return %c0_i32, %c0_i32_0 : i32, i32
  }
  func.func @transform_2(%arg0: i32) -> (i32, i32) {
    %c0_i32 = arith.constant 0 : i32
    %c0_i32_0 = arith.constant 0 : i32
    %c0_i32_1 = arith.constant 0 : i32
    return %c0_i32, %c0_i32_0 : i32, i32
  }
  func.func @transform_3(%arg0: i32) -> (i32, i32) {
    %c0_i32 = arith.constant 0 : i32
    %c0_i32_0 = arith.constant 0 : i32
    return %arg0, %c0_i32 : i32, i32
  }
}

</mosaic_0001>

<bundles_post_ra>
// kernel: tpu_custom_call.1
= control target key start
LH: loop header
LB: loop body
LE: loop exit
PB: predicated region body
PF: predicated region fallthrough
CT: control target
= control target key end

     0   :  { %s893_s12 = smov 0   ;;  %s1187_s0 = inlined_call_operand.vmem [shape: f32[16,1024], index: 0, kind: input, shape index: {}]   ;;  %s1188_s1 = inlined_call_operand.vmem [shape: f32[128,64], index: 1, kind: input, shape index: {}]   ;;  %s1189_s2 = inlined_call_operand.vmem [shape: f32[1,64], index: 2, kind: input, shape index: {}]   ;;  %s1190_s3 = inlined_call_operand.vmem [shape: f32[128,64], index: 3, kind: output, shape index: {}]  }
   0x1 LB: > { %s899_s13 = sadd.s32 4294967295, %s867_s12   ;;  %p774_p0 = scmp.ge.s32.totalorder %s867_s12, 1  ;;  %s867_s12 = sphi %s893_s12, %s13_s12  }
   0x2   : > { %p137_p1 = scmp.lt.s32.totalorder %s867_s12, 3 }
   0x4   : > { %p138_p2 = pnand %p774_p0, %p137_p1 }
   0x5   : > { %p161_p3 = scmp.lt.s32.totalorder (!%p138_p2), %s899_s13, 1  ;;  %s869_s19 = smov (!%p138_p2), 64  }
   0x6   : > { %141 = sbr.rel (%p138_p2) target bundleno = 677 (0x2a5), region = 32  ;;  %s777_s27 = sshll.u32 (!%p138_p2), %s899_s13, 3 }
   0x7   : > { %p167_p4 = scmp.lt.s32.totalorder (!%p138_p2), %s777_s27, 15 }
   0xb   : > { %s162_s14 = scalar_select %p161_p3, %s899_s13, 1  ;;  %vm193_vm0 = vcmask 1047556   ;;  %v870_v16 = vmov 1983009808   ;;  %v871_v27 = vmov 1934713408  }
   0xc   : > { %v198_v17 = vunpack.c.l.s4 %v870_v16  ;;  %v246_v28 = vunpack.c.l.s4 %v871_v27  ;;  %vm469_vm1 = vcmask 523264   ;;  %s1192_s27 = smov (!%p167_p4, %s777_s27), 15 }
   0xd   : > { %s781_s15 = sshll.u32 %s162_s14, 6  ;;  %s778_s28 = sshll.u32 %s1192_s27, 3 }
   0xe   : > { %s165_s18 = scalar_lea.vmem %s1187_s0, %s781_s15  ;;  %v932_v18 = vunpack.c.0.s8 %v198_v17  ;;  %v942_v37 = vunpack.c.0.s8 %v246_v28  ;;  %s170_s6 = scalar_lea.vmem %s1190_s3, %s778_s28 }
   0xf   : > { %v308_v0 = vld [vmem:[%s165_s18 + $0x38] sm:$0xff]  ;;  %v307_v1 = vld [vmem:[%s165_s18 + $0x30] sm:$0xff]  ;;  %v306_v2 = vld [vmem:[%s165_s18 + $0x28] sm:$0xff] }
  0x10   : > { %322 = vrot.lane.b32.xlu1 %v308_v0, %s869_s19  ;;  %v349_v3 = vrot.slane %v308_v0, 4  ;;  %318 = vrot.lane.b32.xlu0 %v307_v1, %s869_s19  ;;  %v351_v4 = vrot.slane %v307_v1, 4  ;;  %v325_v5 = vrot.slane %v306_v2, 4  ;;  %v305_v6 = vld [vmem:[%s165_s18 + $0x20] sm:$0xff]  ;;  %v916_v12 = vld [vmem:[%s165_s18 + $0x18] sm:$0xff] }
  0x11   : > { %v327_v7 = vrot.slane %v305_v6, 4  ;;  %v918_v13 = vld [vmem:[%s165_s18 + $0x8] sm:$0xff]  ;;  %v924_v14 = vld [vmem:[%s165_s18 + $0x10] sm:$0xff]  ;;  %v928_v15 = vld [vmem:[%s165_s18] sm:$0xff] }
  0x12   : > { %v350_v8 = vsel %vm193_vm0, %v349_v3, %v307_v1  ;;  %v352_v9 = vsel %vm193_vm0, %v308_v0, %v351_v4  ;;  %v326_v10 = vsel %vm193_vm0, %v325_v5, %v305_v6  ;;  %185 = vrot.lane.b32.xlu2 %v924_v14, %s869_s19 }
  0x13   : > { %v328_v11 = vsel %vm193_vm0, %v306_v2, %v327_v7  ;;  %v356_v19 = vperm.slane %v350_v8, %v932_v18  ;;  %v360_v20 = vperm.slane %v352_v9, %v932_v18  ;;  %v332_v33 = vperm.slane %v326_v10, %v932_v18 }
  0x14   : > { %v336_v34 = vperm.slane %v328_v11, %v932_v18 }
  0x15   : > { %v399_v29 = vrot.slane %v356_v19, 4  ;;  %v411_v30 = vrot.slane %v360_v20, 4  ;;  %v375_v46 = vrot.slane %v332_v33, 4 }
  0x16   : > { %v387_v47 = vrot.slane %v336_v34, 4 }
  0x18   : > { %314 = vrot.lane.b32.xlu1 %v306_v2, %s869_s19  ;;  %310 = vrot.lane.b32.xlu0 %v305_v6, %s869_s19 }
  0x1a   : > { %177 = vrot.lane.b32.xlu2 %v928_v15, %s869_s19 }
  0x20   : > { %189 = vrot.lane.b32.xlu0 %v916_v12, %s869_s19  ;;  %181 = vrot.lane.b32.xlu1 %v918_v13, %s869_s19 }
  0x82   : > { %v323_v21 = vpop.permute.xlu1 %322  ;;  %v319_v22 = vpop.permute.xlu0 %318 }
  0x83   : > { %v361_v23 = vrot.slane %v323_v21, 4  ;;  %v363_v24 = vrot.slane %v319_v22, 4 }
  0x85   : > { %v362_v25 = vsel %vm193_vm0, %v361_v23, %v319_v22  ;;  %v364_v26 = vsel %vm193_vm0, %v323_v21, %v363_v24  ;;  %v217_v23 = vrot.slane %v916_v12, 4  ;;  %v192_v24 = vrot.slane %v918_v13, 4 }
  0x86   : > { %v368_v31 = vperm.slane %v362_v25, %v932_v18  ;;  %v372_v32 = vperm.slane %v364_v26, %v932_v18  ;;  %v186_v26 = vpop.permute.xlu2 %185 }
  0x87   : > { %v218_v27 = vsel %vm193_vm0, %v217_v23, %v924_v14  ;;  %v194_v28 = vsel %vm193_vm0, %v192_v24, %v928_v15 }
  0x88   : > { %v397_v35 = vrot.slane %v368_v31, 4  ;;  %v409_v36 = vrot.slane %v372_v32, 4  ;;  %v400_v38 = vsel %vm193_vm0, %v368_v31, %v399_v29  ;;  %v412_v41 = vsel %vm193_vm0, %v372_v32, %v411_v30 }
  0x89   : > { %v420_v50 = vperm.slane %v412_v41, %v942_v37  ;;  %v408_v51 = vperm.slane %v400_v38, %v942_v37  ;;  %v231_v31 = vrot.slane %v186_v26, 4  ;;  %v224_v32 = vperm.slane %v218_v27, %v932_v18 }
  0x8a   : > { %v315_v39 = vpop.permute.xlu1 %314  ;;  %v311_v40 = vpop.permute.xlu0 %310  ;;  %v398_v44 = vsel %vm193_vm0, %v397_v35, %v356_v19  ;;  %v410_v45 = vsel %vm193_vm0, %v409_v36, %v360_v20  ;;  %v219_v36 = vrot.slane %v924_v14, 4 }
  0x8b   : > { %v337_v42 = vrot.slane %v315_v39, 4  ;;  %v339_v43 = vrot.slane %v311_v40, 4  ;;  %v404_v54 = vperm.slane %v398_v44, %v942_v37  ;;  %v416_v55 = vperm.slane %v410_v45, %v942_v37 }
  0x8c   : > { %v433_v61 = vrot.slane %v420_v50, 4  ;;  %v425_v63 = vrot.slane %v408_v51, 4 }
  0x8d   : > { %v338_v48 = vsel %vm193_vm0, %v337_v42, %v311_v40  ;;  %v340_v49 = vsel %vm193_vm0, %v315_v39, %v339_v43  ;;  %v421_v1 = vrot.slane %v404_v54, 4  ;;  %v429_v3 = vrot.slane %v416_v55, 4 }
  0x8e   : > { %v344_v52 = vperm.slane %v338_v48, %v932_v18  ;;  %v348_v53 = vperm.slane %v340_v49, %v932_v18  ;;  %v267_v39 = vrot.slane %v224_v32, 4  ;;  %v178_v42 = vpop.permute.xlu2 %177  ;;  %v195_v48 = vrot.slane %v928_v15, 4 }
  0x8f   : > { %v207_v44 = vrot.slane %v178_v42, 4 }
  0x90   : > { %v373_v56 = vrot.slane %v344_v52, 4  ;;  %v385_v57 = vrot.slane %v348_v53, 4  ;;  %v388_v58 = vsel %vm193_vm0, %v348_v53, %v387_v47  ;;  %v376_v59 = vsel %vm193_vm0, %v344_v52, %v375_v46 }
  0x91   : > { %v396_v60 = vperm.slane %v388_v58, %v942_v37  ;;  %v384_v62 = vperm.slane %v376_v59, %v942_v37  ;;  %v220_v47 = vsel %vm193_vm0, %v916_v12, %v219_v36 }
  0x92   : > { %v374_v0 = vsel %vm193_vm0, %v373_v56, %v332_v33  ;;  %v386_v2 = vsel %vm193_vm0, %v385_v57, %v336_v34  ;;  %v190_v25 = vpop.permute.xlu0 %189  ;;  %v182_v30 = vpop.permute.xlu1 %181  ;;  %v200_v33 = vperm.slane %v194_v28, %v932_v18  ;;  %v228_v52 = vperm.slane %v220_v47, %v932_v18 }
  0x93   : > { %v434_v4 = vsel %vm193_vm0, %v433_v61, %v396_v60  ;;  %v426_v5 = vsel %vm193_vm0, %v425_v63, %v384_v62  ;;  %v380_v6 = vperm.slane %v374_v0, %v942_v37  ;;  %v392_v7 = vperm.slane %v386_v2, %v942_v37 }
  0x94   : > { %457 = vrot.lane.b32.xlu0 %v434_v4, %s869_s19  ;;  %449 = vrot.lane.b32.xlu2 %v426_v5, %s869_s19  ;;  %v435_v8 = vrot.slane %v396_v60, 4  ;;  %v427_v9 = vrot.slane %v384_v62, 4  ;;  %v229_v29 = vrot.slane %v190_v25, 4  ;;  %v205_v35 = vrot.slane %v182_v30, 4 }
  0x95   : > { %v422_v10 = vsel %vm193_vm0, %v421_v1, %v380_v6  ;;  %v431_v11 = vrot.slane %v392_v7, 4  ;;  %v430_v16 = vsel %vm193_vm0, %v429_v3, %v392_v7  ;;  %v423_v17 = vrot.slane %v380_v6, 4 }
  0x96   : > { %445 = vrot.lane.b32.xlu1 %v422_v10, %s869_s19  ;;  %v436_v19 = vsel %vm193_vm0, %v420_v50, %v435_v8  ;;  %v428_v20 = vsel %vm193_vm0, %v408_v51, %v427_v9  ;;  %v230_v34 = vsel %vm193_vm0, %v229_v29, %v186_v26  ;;  %v232_v38 = vsel %vm193_vm0, %v190_v25, %v231_v31 }
  0x97   : > { %v432_v21 = vsel %vm193_vm0, %v416_v55, %v431_v11  ;;  %v424_v22 = vsel %vm193_vm0, %v404_v54, %v423_v17  ;;  %v243_v40 = vrot.slane %v200_v33, 4  ;;  %v236_v41 = vperm.slane %v230_v34, %v932_v18 }
  0x98   : > { %v206_v43 = vsel %vm193_vm0, %v205_v35, %v178_v42  ;;  %v240_v45 = vperm.slane %v232_v38, %v932_v18  ;;  %v208_v14 = vsel %vm193_vm0, %v182_v30, %v207_v44  ;;  %v196_v55 = vsel %vm193_vm0, %v918_v13, %v195_v48 }
  0x99   : > { %v212_v46 = vperm.slane %v206_v43, %v932_v18  ;;  %v268_v50 = vsel %vm193_vm0, %v236_v41, %v267_v39  ;;  %v216_v54 = vperm.slane %v208_v14, %v932_v18  ;;  %v204_v57 = vperm.slane %v196_v55, %v932_v18  ;;  %v659_v55 = vld [vmem:[%s1188_s1 + $0x70] sm:$0xff] }
  0x9a   : > { %v276_v51 = vperm.slane %v268_v50, %v942_v37  ;;  %v277_v53 = vrot.slane %v240_v45, 4  ;;  %v279_v60 = vrot.slane %v228_v52, 4  ;;  %v265_v2 = vrot.slane %v236_v41, 4 }
  0x9b   : > { %v244_v49 = vsel %vm193_vm0, %v212_v46, %v243_v40  ;;  %v253_v59 = vrot.slane %v216_v54, 4  ;;  %v255_v63 = vrot.slane %v204_v57, 4  ;;  %v241_v0 = vrot.slane %v212_v46, 4 }
  0x9c   : > { %455 = vrot.lane.b32.xlu0 %v432_v21, %s869_s19  ;;  %453 = vrot.lane.b32.xlu2 %v430_v16, %s869_s19  ;;  %v252_v12 = vperm.slane %v244_v49, %v942_v37  ;;  %v293_v56 = vrot.slane %v276_v51, 4  ;;  %v278_v58 = vsel %vm193_vm0, %v277_v53, %v228_v52  ;;  %v280_v3 = vsel %vm193_vm0, %v240_v45, %v279_v60 }
  0x9d   : > { %v284_v61 = vperm.slane %v278_v58, %v942_v37  ;;  %v254_v62 = vsel %vm193_vm0, %v253_v59, %v204_v57  ;;  %v256_v18 = vsel %vm193_vm0, %v216_v54, %v255_v63  ;;  %v242_v5 = vsel %vm193_vm0, %v241_v0, %v200_v33  ;;  %v660_v54 = vld [vmem:[%s1188_s1 + $0x78] sm:$0xff] }
  0x9e   : > { %459 = vrot.lane.b32.xlu1 %v436_v19, %s869_s19  ;;  %v294_v15 = vsel %vm193_vm0, %v293_v56, %v252_v12  ;;  %v260_v1 = vperm.slane %v254_v62, %v942_v37  ;;  %v288_v6 = vperm.slane %v280_v3, %v942_v37  ;;  %v264_v7 = vperm.slane %v256_v18, %v942_v37  ;;  %v657_v56 = vld [vmem:[%s1188_s1 + $0x60] sm:$0xff] }
  0x9f   : > { %v297_v13 = vrot.slane %v284_v61, 4  ;;  %v248_v8 = vperm.slane %v242_v5, %v942_v37  ;;  %v295_v9 = vrot.slane %v252_v12, 4  ;;  %v266_v10 = vsel %vm193_vm0, %v265_v2, %v224_v32  ;;  %783 = vmatpush.msra.mxu2 %v660_v54  ;;  %784 = vmatpush.msra.mxu3 %v660_v54  ;;  %v658_v12 = vld [vmem:[%s1188_s1 + $0x68] sm:$0xff] }
  0xa0   : > { %v272_v11 = vperm.slane %v266_v10, %v942_v37  ;;  %v303_v19 = vrot.slane %v264_v7, 4  ;;  %v872_v44 = vmov 128.0   ;;  %665 = vmatpush.msra.mxu0 %v660_v54  ;;  %782 = vmatpush.msra.mxu1 %v660_v54 }
  0xa1   : > { %v298_v4 = vsel %vm193_vm0, %v297_v13, %v260_v1  ;;  %v291_v16 = vrot.slane %v248_v8, 4  ;;  %v296_v17 = vsel %vm193_vm0, %v276_v51, %v295_v9  ;;  %843 = vrcp.f32 %v872_v44  ;;  %786 = vmatpush.msra.mxu2 %v659_v55  ;;  %787 = vmatpush.msra.mxu3 %v659_v55 }
  0xa2   : > { %v289_v21 = vrot.slane %v272_v11, 4  ;;  %v304_v24 = vsel %vm193_vm0, %v288_v6, %v303_v19  ;;  %666 = vmatpush.msra.mxu0 %v659_v55  ;;  %785 = vmatpush.msra.mxu1 %v659_v55 }
  0xa3   : > { %v292_v23 = vsel %vm193_vm0, %v272_v11, %v291_v16  ;;  %789 = vmatpush.msra.mxu2 %v658_v12  ;;  %790 = vmatpush.msra.mxu3 %v658_v12 }
  0xa4   : > { %451 = vrot.lane.b32.xlu0 %v428_v20, %s869_s19  ;;  %447 = vrot.lane.b32.xlu2 %v424_v22, %s869_s19  ;;  %v301_v20 = vrot.slane %v288_v6, 4  ;;  %v299_v22 = vrot.slane %v260_v1, 4  ;;  %v290_v26 = vsel %vm193_vm0, %v289_v21, %v248_v8 }
  0xa5   : > { %667 = vmatpush.msra.mxu0 %v658_v12  ;;  %788 = vmatpush.msra.mxu1 %v658_v12 }
  0xa6   : > { %v302_v25 = vsel %vm193_vm0, %v301_v20, %v264_v7  ;;  %v300_v27 = vsel %vm193_vm0, %v284_v61, %v299_v22  ;;  %792 = vmatpush.msra.mxu2 %v657_v56  ;;  %793 = vmatpush.msra.mxu3 %v657_v56 }
  0xa7   : > { %v844_v45 = vpop.eup %843  ;;  %668 = vmatpush.msra.mxu0 %v657_v56  ;;  %791 = vmatpush.msra.mxu1 %v657_v56 }
  0xa8   : > { %v495_v46 = vmul.f32 128.0, %v844_v45  ;;  %vm499_vm2 = vweird.f32 %v844_v45 }
  0xaa   : > { %v496_v47 = vsub.f32 1.0, %v495_v46 }
  0xac   : > { %v497_v48 = vmul.f32 %v844_v45, %v496_v47 }
  0xae   : > { %v498_v14 = vadd.f32 %v844_v45, %v497_v48 }
  0xb0   : > { %v1045_v49 = vsel %vm499_vm2, %v844_v45, %v498_v14 }
  0xee   : > { %v450_v28 = vpop.permute.xlu2 %449 }
  0xef   : > { %v472_v38 = vsel %vm469_vm1, %v294_v15, %v450_v28  ;;  %v651_v28 = vld [vmem:[%s1188_s1 + $0x30] sm:$0xff] }
  0xf6   : > { %v454_v29 = vpop.permute.xlu2 %453 }
  0xf7   : > { %v474_v37 = vsel %vm469_vm1, %v298_v4, %v454_v29  ;;  %v650_v29 = vld [vmem:[%s1188_s1 + $0x28] sm:$0xff] }
  0xf8   : > { %486 = vadd.xlane.f32.xlu1 %v474_v37 }
  0xfe   : > { %v448_v34 = vpop.permute.xlu2 %447 }
  0xff   : > { %v1034_v39 = vsel %vm469_vm1, %v292_v23, %v448_v34  ;;  %v656_v23 = vld [vmem:[%s1188_s1 + $0x58] sm:$0xff] }
 0x100   : > { %795 = vmatpush.msra.mxu2 %v656_v23  ;;  %796 = vmatpush.msra.mxu3 %v656_v23 }
 0x101   : > { %669 = vmatpush.msra.mxu0 %v656_v23  ;;  %794 = vmatpush.msra.mxu1 %v656_v23 }
 0x106   : > { %v458_v30 = vpop.permute.xlu0 %457 }
 0x107   : > { %v476_v31 = vsel %vm469_vm1, %v302_v25, %v458_v30  ;;  %v654_v25 = vld [vmem:[%s1188_s1 + $0x48] sm:$0xff]  ;;  %v648_v30 = vld [vmem:[%s1188_s1 + $0x18] sm:$0xff] }
 0x108   : > { %v446_v32 = vpop.permute.xlu1 %445  ;;  %490 = vadd.xlane.f32.xlu2 %v476_v31 }
 0x109   : > { %v470_v33 = vsel %vm469_vm1, %v290_v26, %v446_v32  ;;  %v653_v26 = vld [vmem:[%s1188_s1 + $0x40] sm:$0xff]  ;;  %v646_v32 = vld [vmem:[%s1188_s1 + $0x8] sm:$0xff] }
 0x10a   : > { %478 = vadd.xlane.f32.xlu0 %v470_v33 }
 0x10e   : > { %v456_v35 = vpop.permute.xlu0 %455 }
 0x10f   : > { %v475_v36 = vsel %vm469_vm1, %v300_v27, %v456_v35  ;;  %v652_v27 = vld [vmem:[%s1188_s1 + $0x38] sm:$0xff] }
 0x110   : > { %488 = vadd.xlane.f32.xlu1 %v475_v36  ;;  %482 = vadd.xlane.f32.xlu2 %v472_v38  ;;  %v460_v40 = vpop.permute.xlu1 %459 }
 0x111   : > { %v1041_v43 = vsel %vm469_vm1, %v304_v24, %v460_v40  ;;  %v655_v24 = vld [vmem:[%s1188_s1 + $0x50] sm:$0xff] }
 0x112   : > { %480 = vadd.xlane.f32.xlu0 %v1034_v39  ;;  %798 = vmatpush.msra.mxu2 %v655_v24 }
 0x113   : > { %799 = vmatpush.msra.mxu3 %v655_v24  ;;  %670 = vmatpush.msra.mxu0 %v655_v24 }
 0x114   : > { %797 = vmatpush.msra.mxu1 %v655_v24  ;;  %801 = vmatpush.msra.mxu2 %v654_v25 }
 0x115   : > { %802 = vmatpush.msra.mxu3 %v654_v25  ;;  %671 = vmatpush.msra.mxu0 %v654_v25 }
 0x116   : > { %v452_v41 = vpop.permute.xlu0 %451  ;;  %800 = vmatpush.msra.mxu1 %v654_v25  ;;  %804 = vmatpush.msra.mxu2 %v653_v26 }
 0x117   : > { %v1038_v42 = vsel %vm469_vm1, %v296_v17, %v452_v41  ;;  %805 = vmatpush.msra.mxu3 %v653_v26  ;;  %672 = vmatpush.msra.mxu0 %v653_v26 }
 0x118   : > { %484 = vadd.xlane.f32.xlu1 %v1038_v42  ;;  %492 = vadd.xlane.f32.xlu2 %v1041_v43 }
 0x119   : > { %803 = vmatpush.msra.mxu1 %v653_v26  ;;  %807 = vmatpush.msra.mxu2 %v652_v27 }
 0x11a   : > { %808 = vmatpush.msra.mxu3 %v652_v27  ;;  %673 = vmatpush.msra.mxu0 %v652_v27 }
 0x11b   : > { %806 = vmatpush.msra.mxu1 %v652_v27  ;;  %810 = vmatpush.msra.mxu2 %v651_v28 }
 0x11c   : > { %811 = vmatpush.msra.mxu3 %v651_v28  ;;  %674 = vmatpush.msra.mxu0 %v651_v28 }
 0x11d   : > { %809 = vmatpush.msra.mxu1 %v651_v28  ;;  %813 = vmatpush.msra.mxu2 %v650_v29 }
 0x11e   : > { %814 = vmatpush.msra.mxu3 %v650_v29  ;;  %675 = vmatpush.msra.mxu0 %v650_v29 }
 0x11f   : > { %812 = vmatpush.msra.mxu1 %v650_v29 }
 0x16b   : > { %v487_v50 = vpop.xlane.xlu1 %486 }
 0x16c   : > { %v505_v51 = vmul.f32 %v1045_v49, %v487_v50 }
 0x16e   : > { %v1048_v52 = vsub.f32 %v474_v37, %v505_v51  ;;  %v649_v37 = vld [vmem:[%s1188_s1 + $0x20] sm:$0xff] }
 0x16f   : > { %816 = vmatpush.msra.mxu2 %v649_v37  ;;  %817 = vmatpush.msra.mxu3 %v649_v37 }
 0x170   : > { %v521_v53 = vmul.f32 %v1048_v52, %v1048_v52  ;;  %676 = vmatpush.msra.mxu0 %v649_v37  ;;  %815 = vmatpush.msra.mxu1 %v649_v37 }
 0x171   : > { %819 = vmatpush.msra.mxu2 %v648_v30  ;;  %820 = vmatpush.msra.mxu3 %v648_v30 }
 0x172   : > { %533 = vadd.xlane.f32.xlu2 %v521_v53  ;;  %677 = vmatpush.msra.mxu0 %v648_v30 }
 0x173   : > { %818 = vmatpush.msra.mxu1 %v648_v30 }
 0x17b   : > { %v491_v15 = vpop.xlane.xlu2 %490 }
 0x17c   : > { %v507_v57 = vmul.f32 %v1045_v49, %v491_v15 }
 0x17d   : > { %v479_v58 = vpop.xlane.xlu0 %478 }
 0x17e   : > { %v1065_v59 = vsub.f32 %v476_v31, %v507_v57  ;;  %v501_v60 = vmul.f32 %v1045_v49, %v479_v58  ;;  %v647_v31 = vld [vmem:[%s1188_s1 + $0x10] sm:$0xff] }
 0x17f   : > { %822 = vmatpush.msra.mxu2 %v647_v31  ;;  %823 = vmatpush.msra.mxu3 %v647_v31 }
 0x180   : > { %v1068_v61 = vsub.f32 %v470_v33, %v501_v60  ;;  %v523_v62 = vmul.f32 %v1065_v59, %v1065_v59  ;;  %678 = vmatpush.msra.mxu0 %v647_v31  ;;  %821 = vmatpush.msra.mxu1 %v647_v31  ;;  %v645_v33 = vld [vmem:[%s1188_s1] sm:$0xff] }
 0x181   : > { %825 = vmatpush.msra.mxu2 %v646_v32  ;;  %826 = vmatpush.msra.mxu3 %v646_v32 }
 0x182   : > { %537 = vadd.xlane.f32.xlu0 %v523_v62  ;;  %v517_v63 = vmul.f32 %v1068_v61, %v1068_v61  ;;  %679 = vmatpush.msra.mxu0 %v646_v32 }
 0x183   : > { %v489_v0 = vpop.xlane.xlu1 %488  ;;  %v483_v1 = vpop.xlane.xlu2 %482  ;;  %824 = vmatpush.msra.mxu1 %v646_v32  ;;  %828 = vmatpush.msra.mxu2 %v645_v33 }
 0x184   : > { %v506_v13 = vmul.f32 %v1045_v49, %v489_v0  ;;  %v503_v2 = vmul.f32 %v1045_v49, %v483_v1  ;;  %525 = vadd.xlane.f32.xlu1 %v517_v63  ;;  %829 = vmatpush.msra.mxu3 %v645_v33 }
 0x185   : > { %v481_v18 = vpop.xlane.xlu0 %480  ;;  %680 = vmatpush.msra.mxu0 %v645_v33  ;;  %827 = vmatpush.msra.mxu1 %v645_v33 }
 0x186   : > { %v1076_v3 = vsub.f32 %v475_v36, %v506_v13  ;;  %v1078_v4 = vsub.f32 %v472_v38, %v503_v2  ;;  %v502_v7 = vmul.f32 %v1045_v49, %v481_v18 }
 0x188   : > { %v519_v5 = vmul.f32 %v1078_v4, %v1078_v4  ;;  %v522_v6 = vmul.f32 %v1076_v3, %v1076_v3  ;;  %v1088_v16 = vsub.f32 %v1034_v39, %v502_v7 }
 0x18a   : > { %529 = vadd.xlane.f32.xlu2 %v519_v5  ;;  %535 = vadd.xlane.f32.xlu0 %v522_v6  ;;  %v518_v22 = vmul.f32 %v1088_v16, %v1088_v16 }
 0x18b   : > { %v485_v8 = vpop.xlane.xlu1 %484  ;;  %v493_v9 = vpop.xlane.xlu2 %492 }
 0x18c   : > { %v504_v10 = vmul.f32 %v1045_v49, %v485_v8  ;;  %v508_v11 = vmul.f32 %v1045_v49, %v493_v9 }
 0x18e   : > { %v1091_v17 = vsub.f32 %v1038_v42, %v504_v10  ;;  %v1094_v19 = vsub.f32 %v1041_v43, %v508_v11 }
 0x190   : > { %v520_v20 = vmul.f32 %v1091_v17, %v1091_v17  ;;  %v524_v21 = vmul.f32 %v1094_v19, %v1094_v19 }
 0x192   : > { %531 = vadd.xlane.f32.xlu0 %v520_v20  ;;  %539 = vadd.xlane.f32.xlu1 %v524_v21 }
 0x193   : > { %527 = vadd.xlane.f32.xlu2 %v518_v22 }
 0x1e5   : > { %v534_v34 = vpop.xlane.xlu2 %533 }
 0x1e6   : > { %v545_v35 = vmul.f32 %v534_v34, %v1045_v49 }
 0x1e8   : > { %v553_v36 = vadd.f32 1e-05, %v545_v35 }
 0x1ea   : > { %845 = vrsqrt.f32 %v553_v36  ;;  %vm603_vm4 = vweird.f32 %v553_v36 }
 0x1f0   : > { %v846_v38 = vpop.eup %845 }
 0x1f1   : > { %v598_v39 = vmul.f32 %v846_v38, %v553_v36  ;;  %vm604_vm3 = vweird.f32 %v846_v38 }
 0x1f2   : > { %vm605_vm5 = vmor %vm603_vm4, %vm604_vm3 }
 0x1f3   : > { %v599_v40 = vmul.f32 %v846_v38, %v598_v39 }
 0x1f5   : > { %v600_v41 = vmul.f32 0.5, %v599_v40  ;;  %v538_v42 = vpop.xlane.xlu0 %537 }
 0x1f6   : > { %v547_v43 = vmul.f32 %v538_v42, %v1045_v49 }
 0x1f7   : > { %v601_v44 = vsub.f32 1.5, %v600_v41  ;;  %v526_v45 = vpop.xlane.xlu1 %525 }
 0x1f8   : > { %v555_v46 = vadd.f32 1e-05, %v547_v43  ;;  %v541_v47 = vmul.f32 %v526_v45, %v1045_v49 }
 0x1f9   : > { %v602_v48 = vmul.f32 %v846_v38, %v601_v44 }
 0x1fa   : > { %847 = vrsqrt.f32 %v555_v46  ;;  %v549_v14 = vadd.f32 1e-05, %v541_v47  ;;  %vm623_vm7 = vweird.f32 %v555_v46 }
 0x1fb   : > { %v606_v50 = vsel %vm605_vm5, %v846_v38, %v602_v48 }
 0x1fc   : > { %849 = vrsqrt.f32 %v549_v14  ;;  %v641_v51 = vmul.f32 %v606_v50, %v1048_v52  ;;  %vm563_vm10 = vweird.f32 %v549_v14 }
 0x1fd   : > { %v530_v53 = vpop.xlane.xlu2 %529  ;;  %v536_v54 = vpop.xlane.xlu0 %535 }
 0x1fe   : > { %v543_v55 = vmul.f32 %v530_v53, %v1045_v49  ;;  %v546_v12 = vmul.f32 %v536_v54, %v1045_v49  ;;  %693 = vmatmul.f32.vlgmr.msra.gmra.mxu2 %v641_v51 }
 0x200   : > { %v848_v56 = vpop.eup %847  ;;  %v551_v15 = vadd.f32 1e-05, %v543_v55  ;;  %v1144_v57 = vadd.f32 1e-05, %v546_v12 }
 0x201   : > { %v618_v58 = vmul.f32 %v848_v56, %v555_v46  ;;  %vm624_vm6 = vweird.f32 %v848_v56 }
 0x202   : > { %v850_v60 = vpop.eup %849  ;;  %851 = vrsqrt.f32 %v551_v15  ;;  %vm625_vm8 = vmor %vm623_vm7, %vm624_vm6  ;;  %vm583_vm14 = vweird.f32 %v551_v15  ;;  %vm613_vm15 = vweird.f32 %v1144_v57 }
 0x203   : > { %v619_v62 = vmul.f32 %v848_v56, %v618_v58  ;;  %v558_v63 = vmul.f32 %v850_v60, %v549_v14  ;;  %853 = vrsqrt.f32 %v1144_v57  ;;  %vm564_vm9 = vweird.f32 %v850_v60 }
 0x204   : > { %vm565_vm11 = vmor %vm563_vm10, %vm564_vm9 }
 0x205   : > { %v620_v0 = vmul.f32 0.5, %v619_v62  ;;  %v559_v52 = vmul.f32 %v850_v60, %v558_v63  ;;  %v540_v1 = vpop.xlane.xlu1 %539  ;;  %v532_v13 = vpop.xlane.xlu0 %531  ;;  %v842_v63 = vld [vmem:[%s1189_s2] ss:$0 sm:$0xff] }
 0x206   : > { %v548_v2 = vmul.f32 %v540_v1, %v1045_v49  ;;  %v528_v18 = vpop.xlane.xlu2 %527  ;;  %v544_v5 = vmul.f32 %v532_v13, %v1045_v49 }
 0x207   : > { %v621_v6 = vsub.f32 1.5, %v620_v0  ;;  %v560_v7 = vmul.f32 0.5, %v559_v52  ;;  %v542_v8 = vmul.f32 %v528_v18, %v1045_v49 }
 0x208   : > { %v852_v9 = vpop.eup %851  ;;  %v1150_v10 = vadd.f32 1e-05, %v548_v2  ;;  %v1152_v11 = vadd.f32 1e-05, %v544_v5 }
 0x209   : > { %v854_v20 = vpop.eup %853  ;;  %v561_v21 = vsub.f32 1.5, %v560_v7  ;;  %v578_v22 = vmul.f32 %v852_v9, %v551_v15  ;;  %v550_v23 = vadd.f32 1e-05, %v542_v8  ;;  %v622_v24 = vmul.f32 %v848_v56, %v621_v6 }
 0x20a   : > { %v608_v25 = vmul.f32 %v854_v20, %v1144_v57  ;;  %855 = vrsqrt.f32 %v1150_v10  ;;  %vm584_vm12 = vweird.f32 %v852_v9  ;;  %vm614_vm13 = vweird.f32 %v854_v20 }
 0x20b   : > { %v579_v49 = vmul.f32 %v852_v9, %v578_v22  ;;  %857 = vrsqrt.f32 %v550_v23  ;;  %v626_v26 = vsel %vm625_vm8, %v848_v56, %v622_v24  ;;  %v562_v29 = vmul.f32 %v850_v60, %v561_v21  ;;  %vm585_vm0 = vmor %vm583_vm14, %vm584_vm12 }
 0x20c   : > { %v609_v27 = vmul.f32 %v854_v20, %v608_v25  ;;  %859 = vrsqrt.f32 %v1152_v11  ;;  %v643_v28 = vmul.f32 %v626_v26, %v1065_v59  ;;  %vm615_vm2 = vmor %vm613_vm15, %vm614_vm13  ;;  %vm633_vm5 = vweird.f32 %v1150_v10 }
 0x20d   : > { %v580_v37 = vmul.f32 0.5, %v579_v49  ;;  %v566_v31 = vsel %vm565_vm11, %v850_v60, %v562_v29  ;;  %vm573_vm7 = vweird.f32 %v550_v23  ;;  %vm593_vm9 = vweird.f32 %v1152_v11 }
 0x20e   : > { %v610_v30 = vmul.f32 0.5, %v609_v27  ;;  %699 = vmatmul.f32.vlgmr.msra.gmra.mxu3 %v643_v28  ;;  %v637_v33 = vmul.f32 %v566_v31, %v1068_v61 }
 0x20f   : > { %v581_v32 = vsub.f32 1.5, %v580_v37 }
 0x210   : > { %v856_v34 = vpop.eup %855  ;;  %v611_v35 = vsub.f32 1.5, %v610_v30  ;;  %681 = vmatmul.f32.vlgmr.msra.gmra.mxu0 %v637_v33 }
 0x211   : > { %v858_v36 = vpop.eup %857  ;;  %v628_v38 = vmul.f32 %v856_v34, %v1150_v10  ;;  %v582_v39 = vmul.f32 %v852_v9, %v581_v32  ;;  %vm634_vm3 = vweird.f32 %v856_v34 }
 0x212   : > { %v860_v59 = vpop.eup %859  ;;  %v568_v40 = vmul.f32 %v858_v36, %v550_v23  ;;  %v612_v41 = vmul.f32 %v854_v20, %v611_v35  ;;  %vm574_vm4 = vweird.f32 %v858_v36  ;;  %vm635_vm8 = vmor %vm633_vm5, %vm634_vm3 }
 0x213   : > { %v629_v42 = vmul.f32 %v856_v34, %v628_v38  ;;  %v588_v43 = vmul.f32 %v860_v59, %v1152_v11  ;;  %v586_v61 = vsel %vm585_vm0, %v852_v9, %v582_v39  ;;  %vm594_vm6 = vweird.f32 %v860_v59  ;;  %vm575_vm10 = vmor %vm573_vm7, %vm574_vm4 }
 0x214   : > { %v569_v44 = vmul.f32 %v858_v36, %v568_v40  ;;  %v639_v45 = vmul.f32 %v586_v61, %v1078_v4  ;;  %v616_v46 = vsel %vm615_vm2, %v854_v20, %v612_v41  ;;  %vm595_vm11 = vmor %vm593_vm9, %vm594_vm6 }
 0x215   : > { %v630_v47 = vmul.f32 0.5, %v629_v42  ;;  %v589_v48 = vmul.f32 %v860_v59, %v588_v43  ;;  %v642_v14 = vmul.f32 %v616_v46, %v1076_v3 }
 0x216   : > { %v570_v50 = vmul.f32 0.5, %v569_v44  ;;  %687 = vmatmul.f32.vlgmr.msra.gmra.mxu1 %v639_v45 }
 0x217   : > { %v631_v51 = vsub.f32 1.5, %v630_v47  ;;  %v590_v53 = vmul.f32 0.5, %v589_v48  ;;  %696 = vmatmul.f32.gmra.mxu2 %v642_v14 }
 0x218   : > { %v571_v54 = vsub.f32 1.5, %v570_v50 }
 0x219   : > { %v591_v55 = vsub.f32 1.5, %v590_v53  ;;  %v632_v12 = vmul.f32 %v856_v34, %v631_v51 }
 0x21a   : > { %v572_v4 = vmul.f32 %v858_v36, %v571_v54 }
 0x21b   : > { %v592_v3 = vmul.f32 %v860_v59, %v591_v55  ;;  %v636_v56 = vsel %vm635_vm8, %v856_v34, %v632_v12 }
 0x21c   : > { %v576_v15 = vsel %vm575_vm10, %v858_v36, %v572_v4  ;;  %v644_v57 = vmul.f32 %v636_v56, %v1094_v19 }
 0x21d   : > { %v638_v58 = vmul.f32 %v576_v15, %v1088_v16  ;;  %v596_v60 = vsel %vm595_vm11, %v860_v59, %v592_v3 }
 0x21e   : > { %v640_v62 = vmul.f32 %v596_v60, %v1091_v17  ;;  %702 = vmatmul.f32.gmra.mxu3 %v644_v57 }
 0x21f   : > { %684 = vmatmul.f32.gmra.mxu0 %v638_v58 }
 0x220   : > { %690 = vmatmul.f32.gmra.mxu1 %v640_v62 }
 0x281   : > { %v694_v19 = vpop.f32.mrf.mxu2 }
 0x282   : > { %v695_v16 = vadd.f32 %v842_v63, %v694_v19 }
 0x284   : > { %710 = vst.msk [vmem:[%s170_s6 + $0x20] sm:$0xff] %vm469_vm1, %v695_v16 }
 0x28d   : > { %v682_v17 = vpop.f32.mrf.mxu0 }
 0x28e   : > { %v683_v0 = vadd.f32 %v842_v63, %v682_v17 }
 0x290   : > { %706 = vst.msk [vmem:[%s170_s6] sm:$0xff] %vm469_vm1, %v683_v0 }
 0x291   : > { %v700_v52 = vpop.f32.mrf.mxu3 }
 0x292   : > { %v701_v1 = vadd.f32 %v842_v63, %v700_v52 }
 0x293   : > { %v688_v13 = vpop.f32.mrf.mxu1 }
 0x294   : > { %712 = vst.msk [vmem:[%s170_s6 + $0x30] sm:$0xff] %vm469_vm1, %v701_v1  ;;  %v689_v2 = vadd.f32 %v842_v63, %v688_v13 }
 0x296   : > { %708 = vst.msk [vmem:[%s170_s6 + $0x10] sm:$0xff] %vm469_vm1, %v689_v2 }
 0x29a   : > { %v697_v18 = vpop.f32.mrf.mxu2 }
 0x29b   : > { %v698_v5 = vadd.f32 %v842_v63, %v697_v18 }
 0x29c   : > { %v685_v6 = vpop.f32.mrf.mxu0 }
 0x29d   : > { %711 = vst.msk [vmem:[%s170_s6 + $0x28] sm:$0xff] %vm469_vm1, %v698_v5  ;;  %v686_v7 = vadd.f32 %v842_v63, %v685_v6  ;;  %v691_v8 = vpop.f32.mrf.mxu1 }
 0x29e   : > { %v692_v9 = vadd.f32 %v842_v63, %v691_v8 }
 0x29f   : > { %707 = vst.msk [vmem:[%s170_s6 + $0x8] sm:$0xff] %vm469_vm1, %v686_v7 }
 0x2a0   : > { %709 = vst.msk [vmem:[%s170_s6 + $0x18] sm:$0xff] %vm469_vm1, %v692_v9 }
 0x2a1   : > { %v703_v10 = vpop.f32.mrf.mxu3 }
 0x2a2   : > { %v704_v11 = vadd.f32 %v842_v63, %v703_v10 }
 0x2a4   : > { %713 = vst.msk [vmem:[%s170_s6 + $0x38] sm:$0xff] %vm469_vm1, %v704_v11 }
 0x2a5 PF: > { %s13_s12 = sadd.s32 1, %s867_s12  }
 0x2a6   : > { %p10_p5 = scmp.ge.s32.totalorder %s13_s12, 4  }
 0x2a8   :  { %12 = sbr.rel (!%p10_p5) target bundleno = 1 (0x1), region = 62 }

</bundles_post_ra>
